<compile_context>
chip_gen: v5e
topology: v5e:2x2
jax: 0.10.0
libtpu: 0.0.40
codegen_flags: <defaults>
</compile_context>

<pallas_src>
import functools

import jax
import jax.numpy as jnp
from jax.experimental import pallas as pl
from jax.experimental.pallas import tpu as pltpu

# Layer sizes (in_features, out_features): Linear(8,6), (6,4), (4,2), (2,1).
_LAYER_SIZES = [(8, 6), (6, 4), (4, 2), (2, 1)]
_IN0 = _LAYER_SIZES[0][0]            # 8 input features
_LANE_BATCH = 128 // _IN0            # 16 batch elements packed per 128-lane row


def _sigmoid(x):
    # sigmoid(x) == 0.5 * (tanh(x/2) + 1): numerically stable; tanh -> EUP slot.
    return 0.5 * (jnp.tanh(0.5 * x) + 1.0)


def mlp_kernel(x_ref, w1_ref, b1_ref, w2_ref, b2_ref, w3_ref, b3_ref,
               w4_ref, b4_ref, o_ref):
    # x_ref: (tb/16, 128) f32, fully dense vregs (16 batch x 8 features per row).
    # wK_ref: block-diagonal (16*fin, 16*fout) weights; bK_ref: (1, 16*fout).
    # o_ref: (tb/16, 16) f32, natural row-major order of y[B, 1].
    h = x_ref[...]
    for w_ref, b_ref in ((w1_ref, b1_ref), (w2_ref, b2_ref),
                         (w3_ref, b3_ref), (w4_ref, b4_ref)):
        h = _sigmoid(jnp.dot(h, w_ref[...],
                             preferred_element_type=jnp.float32) + b_ref[...])
    o_ref[...] = h.astype(o_ref.dtype)


def _block_diag(w, n_rep):
    """w: (fin, fout) -> W_big: (n_rep*fin, n_rep*fout) with
    W_big[s*fin + i, s*fout + o] = w[i, o] and zeros elsewhere."""
    fin, fout = w.shape
    eye = jnp.eye(n_rep, dtype=w.dtype)
    return jnp.einsum("bc,io->bico", eye, w).reshape(n_rep * fin, n_rep * fout)


def prepare_params(params):
    """Build the block-diagonal MXU weights + tiled bias rows (tiny, O(1) work)."""
    big = []
    for i in range(1, len(_LAYER_SIZES) + 1):
        w = params[f"w{i}"].astype(jnp.float32)          # [in, out]
        b = params[f"b{i}"].astype(jnp.float32)          # [1, out]
        big.append(_block_diag(w, _LANE_BATCH))          # (16*in, 16*out)
        big.append(jnp.tile(b.reshape(1, -1), (1, _LANE_BATCH)))  # (1, 16*out)
    return tuple(big)


def _batch_dim_semantics():
    # v7x has 2 TensorCores per chip: shard the batch grid across both cores.
    # Single-TC chips (v5e / v6e) use plain PARALLEL.
    try:
        kind = jax.devices()[0].device_kind.lower()
    except Exception:
        kind = ""
    if "v7" in kind or "tpu7" in kind:
        return (pltpu.CORE_PARALLEL,)
    return (pltpu.PARALLEL,)


@functools.partial(jax.jit, static_argnames=("tb",))
def mlp_forward(x, params, *, tb=2048):
    """x: [B, 8] float32 -> [B, 1] float32 (same semantics as Moudle.forward)."""
    assert tb % 128 == 0, "tb must be a multiple of 128 (lane/sublane tiling)"
    B, F = x.shape
    assert F == _IN0, f"expected {_IN0} input features, got {F}"

    n_blocks = (B + tb - 1) // tb
    Bp = n_blocks * tb

    x = x.astype(jnp.float32)
    if Bp != B:
        x = jnp.pad(x, ((0, Bp - B), (0, 0)))   # padded rows produce garbage, sliced off
    # Free (metadata-only) reshape: each 128-lane row = 16 batch elems x 8 feats.
    x_view = x.reshape(Bp // _LANE_BATCH, _LANE_BATCH * F)

    w1, b1, w2, b2, w3, b3, w4, b4 = prepare_params(params)

    rows = tb // _LANE_BATCH                     # rows per batch tile (mult. of 8)

    def full(a):
        # Whole-array block with a constant index_map: loaded once, VMEM-resident.
        return pl.BlockSpec(a.shape, lambda i: (0, 0))

    out = pl.pallas_call(
        mlp_kernel,
        out_shape=jax.ShapeDtypeStruct((Bp // _LANE_BATCH, _LANE_BATCH),
                                       jnp.float32),
        grid=(n_blocks,),
        in_specs=[
            pl.BlockSpec((rows, _LANE_BATCH * F), lambda i: (i, 0)),  # x tile
            full(w1), full(b1), full(w2), full(b2),
            full(w3), full(b3), full(w4), full(b4),
        ],
        out_specs=pl.BlockSpec((rows, _LANE_BATCH), lambda i: (i, 0)),
        compiler_params=pltpu.CompilerParams(
            dimension_semantics=_batch_dim_semantics()),
    )(x_view, w1, b1, w2, b2, w3, b3, w4, b4)

    # (Bp/16, 16) row-major == [Bp, 1]; free reshape + slice off padding.
    return out.reshape(Bp, 1)[:B]


def init_params(key):
    """Deterministic init mirroring nn.Linear shapes (weights stored [in, out])."""
    params = {}
    keys = jax.random.split(key, 2 * len(_LAYER_SIZES))
    for i, (fan_in, fan_out) in enumerate(_LAYER_SIZES):
        bound = 1.0 / jnp.sqrt(fan_in)
        params[f"w{i + 1}"] = jax.random.uniform(
            keys[2 * i], (fan_in, fan_out), jnp.float32, -bound, bound)
        params[f"b{i + 1}"] = jax.random.uniform(
            keys[2 * i + 1], (1, fan_out), jnp.float32, -bound, bound)
    return params


def reference_forward(x, params):
    h = x
    for i in range(1, len(_LAYER_SIZES) + 1):
        h = jax.nn.sigmoid(h @ params[f"w{i}"] + params[f"b{i}"])
    return h


if __name__ == "__main__":
    key = jax.random.PRNGKey(0)
    k_x, k_p = jax.random.split(key)

    B = 4096                                     # 2 grid blocks at tb=2048
    x = jax.random.normal(k_x, (B, _IN0), jnp.float32)
    params = init_params(k_p)

    out = jax.block_until_ready(mlp_forward(x, params, tb=2048))

    ref = reference_forward(x, params)
    assert out.shape == (B, 1), out.shape
    assert jnp.allclose(out, ref, atol=1e-4, rtol=1e-4), "mismatch vs reference"

    print("KERNEL_OK")
</pallas_src>

<mosaic_0001>
module attributes {stable_mosaic.version = 11 : i64} {
  func.func @mlp_kernel(%arg0: i32, %arg1: memref<128x128xf32, #tpu.memory_space<vmem>>, %arg2: memref<128x96xf32, #tpu.memory_space<vmem>>, %arg3: memref<1x96xf32, #tpu.memory_space<vmem>>, %arg4: memref<96x64xf32, #tpu.memory_space<vmem>>, %arg5: memref<1x64xf32, #tpu.memory_space<vmem>>, %arg6: memref<64x32xf32, #tpu.memory_space<vmem>>, %arg7: memref<1x32xf32, #tpu.memory_space<vmem>>, %arg8: memref<32x16xf32, #tpu.memory_space<vmem>>, %arg9: memref<1x16xf32, #tpu.memory_space<vmem>>, %arg10: memref<128x16xf32, #tpu.memory_space<vmem>>) attributes {dimension_semantics = [#tpu.dimension_semantics<parallel>], iteration_bounds = array<i64: 2>, scalar_prefetch = 0 : i64, scratch_operands = 0 : i64, tpu.core_type = #tpu.core_type<tc>, window_params = [{transform_indices = @transform_0, window_bounds = array<i64: 128, 128>}, {pipeline_mode = #tpu.pipeline_mode<synchronous>, transform_indices = @transform_1, window_bounds = array<i64: 128, 96>}, {pipeline_mode = #tpu.pipeline_mode<synchronous>, transform_indices = @transform_2, window_bounds = array<i64: 1, 96>}, {pipeline_mode = #tpu.pipeline_mode<synchronous>, transform_indices = @transform_3, window_bounds = array<i64: 96, 64>}, {pipeline_mode = #tpu.pipeline_mode<synchronous>, transform_indices = @transform_4, window_bounds = array<i64: 1, 64>}, {pipeline_mode = #tpu.pipeline_mode<synchronous>, transform_indices = @transform_5, window_bounds = array<i64: 64, 32>}, {pipeline_mode = #tpu.pipeline_mode<synchronous>, transform_indices = @transform_6, window_bounds = array<i64: 1, 32>}, {pipeline_mode = #tpu.pipeline_mode<synchronous>, transform_indices = @transform_7, window_bounds = array<i64: 32, 16>}, {pipeline_mode = #tpu.pipeline_mode<synchronous>, transform_indices = @transform_8, window_bounds = array<i64: 1, 16>}, {transform_indices = @transform_9, window_bounds = array<i64: 128, 16>}]} {
    %c0 = arith.constant 0 : index
    %c0_0 = arith.constant 0 : index
    %0 = vector.load %arg1[%c0, %c0_0] : memref<128x128xf32, #tpu.memory_space<vmem>>, vector<128x128xf32>
    %c0_1 = arith.constant 0 : index
    %c0_2 = arith.constant 0 : index
    %1 = vector.load %arg2[%c0_1, %c0_2] : memref<128x96xf32, #tpu.memory_space<vmem>>, vector<128x96xf32>
    %cst = arith.constant dense<0.000000e+00> : vector<128x96xf32>
    %2 = tpu.matmul %0, %1, %cst {dimension_numbers = #tpu.dot_dimension_numbers<[1], [0], [0], [1], [0, 0, 1, 1], [], []>} : vector<128x128xf32>, vector<128x96xf32>, vector<128x96xf32> -> vector<128x96xf32>
    %c0_3 = arith.constant 0 : index
    %c0_4 = arith.constant 0 : index
    %3 = vector.load %arg3[%c0_3, %c0_4] : memref<1x96xf32, #tpu.memory_space<vmem>>, vector<1x96xf32>
    %4 = vector.broadcast %3 : vector<1x96xf32> to vector<128x96xf32>
    %5 = arith.addf %2, %4 : vector<128x96xf32>
    %cst_5 = arith.constant 5.000000e-01 : f32
    %6 = vector.broadcast %cst_5 : f32 to vector<128x96xf32>
    %7 = arith.mulf %6, %5 : vector<128x96xf32>
    %8 = math.tanh %7 : vector<128x96xf32>
    %cst_6 = arith.constant 1.000000e+00 : f32
    %9 = vector.broadcast %cst_6 : f32 to vector<128x96xf32>
    %10 = arith.addf %8, %9 : vector<128x96xf32>
    %cst_7 = arith.constant 5.000000e-01 : f32
    %11 = vector.broadcast %cst_7 : f32 to vector<128x96xf32>
    %12 = arith.mulf %11, %10 : vector<128x96xf32>
    %c0_8 = arith.constant 0 : index
    %c0_9 = arith.constant 0 : index
    %13 = vector.load %arg4[%c0_8, %c0_9] : memref<96x64xf32, #tpu.memory_space<vmem>>, vector<96x64xf32>
    %cst_10 = arith.constant dense<0.000000e+00> : vector<128x64xf32>
    %14 = tpu.matmul %12, %13, %cst_10 {dimension_numbers = #tpu.dot_dimension_numbers<[1], [0], [0], [1], [0, 0, 1, 1], [], []>} : vector<128x96xf32>, vector<96x64xf32>, vector<128x64xf32> -> vector<128x64xf32>
    %c0_11 = arith.constant 0 : index
    %c0_12 = arith.constant 0 : index
    %15 = vector.load %arg5[%c0_11, %c0_12] : memref<1x64xf32, #tpu.memory_space<vmem>>, vector<1x64xf32>
    %16 = vector.broadcast %15 : vector<1x64xf32> to vector<128x64xf32>
    %17 = arith.addf %14, %16 : vector<128x64xf32>
    %cst_13 = arith.constant 5.000000e-01 : f32
    %18 = vector.broadcast %cst_13 : f32 to vector<128x64xf32>
    %19 = arith.mulf %18, %17 : vector<128x64xf32>
    %20 = math.tanh %19 : vector<128x64xf32>
    %cst_14 = arith.constant 1.000000e+00 : f32
    %21 = vector.broadcast %cst_14 : f32 to vector<128x64xf32>
    %22 = arith.addf %20, %21 : vector<128x64xf32>
    %cst_15 = arith.constant 5.000000e-01 : f32
    %23 = vector.broadcast %cst_15 : f32 to vector<128x64xf32>
    %24 = arith.mulf %23, %22 : vector<128x64xf32>
    %c0_16 = arith.constant 0 : index
    %c0_17 = arith.constant 0 : index
    %25 = vector.load %arg6[%c0_16, %c0_17] : memref<64x32xf32, #tpu.memory_space<vmem>>, vector<64x32xf32>
    %cst_18 = arith.constant dense<0.000000e+00> : vector<128x32xf32>
    %26 = tpu.matmul %24, %25, %cst_18 {dimension_numbers = #tpu.dot_dimension_numbers<[1], [0], [0], [1], [0, 0, 1, 1], [], []>} : vector<128x64xf32>, vector<64x32xf32>, vector<128x32xf32> -> vector<128x32xf32>
    %c0_19 = arith.constant 0 : index
    %c0_20 = arith.constant 0 : index
    %27 = vector.load %arg7[%c0_19, %c0_20] : memref<1x32xf32, #tpu.memory_space<vmem>>, vector<1x32xf32>
    %28 = vector.broadcast %27 : vector<1x32xf32> to vector<128x32xf32>
    %29 = arith.addf %26, %28 : vector<128x32xf32>
    %cst_21 = arith.constant 5.000000e-01 : f32
    %30 = vector.broadcast %cst_21 : f32 to vector<128x32xf32>
    %31 = arith.mulf %30, %29 : vector<128x32xf32>
    %32 = math.tanh %31 : vector<128x32xf32>
    %cst_22 = arith.constant 1.000000e+00 : f32
    %33 = vector.broadcast %cst_22 : f32 to vector<128x32xf32>
    %34 = arith.addf %32, %33 : vector<128x32xf32>
    %cst_23 = arith.constant 5.000000e-01 : f32
    %35 = vector.broadcast %cst_23 : f32 to vector<128x32xf32>
    %36 = arith.mulf %35, %34 : vector<128x32xf32>
    %c0_24 = arith.constant 0 : index
    %c0_25 = arith.constant 0 : index
    %37 = vector.load %arg8[%c0_24, %c0_25] : memref<32x16xf32, #tpu.memory_space<vmem>>, vector<32x16xf32>
    %cst_26 = arith.constant dense<0.000000e+00> : vector<128x16xf32>
    %38 = tpu.matmul %36, %37, %cst_26 {dimension_numbers = #tpu.dot_dimension_numbers<[1], [0], [0], [1], [0, 0, 1, 1], [], []>} : vector<128x32xf32>, vector<32x16xf32>, vector<128x16xf32> -> vector<128x16xf32>
    %c0_27 = arith.constant 0 : index
    %c0_28 = arith.constant 0 : index
    %39 = vector.load %arg9[%c0_27, %c0_28] : memref<1x16xf32, #tpu.memory_space<vmem>>, vector<1x16xf32>
    %40 = vector.broadcast %39 : vector<1x16xf32> to vector<128x16xf32>
    %41 = arith.addf %38, %40 : vector<128x16xf32>
    %cst_29 = arith.constant 5.000000e-01 : f32
    %42 = vector.broadcast %cst_29 : f32 to vector<128x16xf32>
    %43 = arith.mulf %42, %41 : vector<128x16xf32>
    %44 = math.tanh %43 : vector<128x16xf32>
    %cst_30 = arith.constant 1.000000e+00 : f32
    %45 = vector.broadcast %cst_30 : f32 to vector<128x16xf32>
    %46 = arith.addf %44, %45 : vector<128x16xf32>
    %cst_31 = arith.constant 5.000000e-01 : f32
    %47 = vector.broadcast %cst_31 : f32 to vector<128x16xf32>
    %48 = arith.mulf %47, %46 : vector<128x16xf32>
    %c0_32 = arith.constant 0 : index
    %c0_33 = arith.constant 0 : index
    %49 = vector.load %arg10[%c0_32, %c0_33] : memref<128x16xf32, #tpu.memory_space<vmem>>, vector<128x16xf32>
    tpu.vector_store %arg10[%c0_32, %c0_33], %48 {strides = array<i32>} : memref<128x16xf32, #tpu.memory_space<vmem>>, vector<128x16xf32>,
    return
  }
  func.func @transform_0(%arg0: i32) -> (i32, i32) {
    %c0_i32 = arith.constant 0 : i32
    %c0_i32_0 = arith.constant 0 : i32
    return %arg0, %c0_i32 : i32, i32
  }
  func.func @transform_1(%arg0: i32) -> (i32, i32) {
    %c0_i32 = arith.constant 0 : i32
    %c0_i32_0 = arith.constant 0 : i32
    %c0_i32_1 = arith.constant 0 : i32
    return %c0_i32, %c0_i32_0 : i32, i32
  }
  func.func @transform_2(%arg0: i32) -> (i32, i32) {
    %c0_i32 = arith.constant 0 : i32
    %c0_i32_0 = arith.constant 0 : i32
    %c0_i32_1 = arith.constant 0 : i32
    return %c0_i32, %c0_i32_0 : i32, i32
  }
  func.func @transform_3(%arg0: i32) -> (i32, i32) {
    %c0_i32 = arith.constant 0 : i32
    %c0_i32_0 = arith.constant 0 : i32
    %c0_i32_1 = arith.constant 0 : i32
    return %c0_i32, %c0_i32_0 : i32, i32
  }
  func.func @transform_4(%arg0: i32) -> (i32, i32) {
    %c0_i32 = arith.constant 0 : i32
    %c0_i32_0 = arith.constant 0 : i32
    %c0_i32_1 = arith.constant 0 : i32
    return %c0_i32, %c0_i32_0 : i32, i32
  }
  func.func @transform_5(%arg0: i32) -> (i32, i32) {
    %c0_i32 = arith.constant 0 : i32
    %c0_i32_0 = arith.constant 0 : i32
    %c0_i32_1 = arith.constant 0 : i32
    return %c0_i32, %c0_i32_0 : i32, i32
  }
  func.func @transform_6(%arg0: i32) -> (i32, i32) {
    %c0_i32 = arith.constant 0 : i32
    %c0_i32_0 = arith.constant 0 : i32
    %c0_i32_1 = arith.constant 0 : i32
    return %c0_i32, %c0_i32_0 : i32, i32
  }
  func.func @transform_7(%arg0: i32) -> (i32, i32) {
    %c0_i32 = arith.constant 0 : i32
    %c0_i32_0 = arith.constant 0 : i32
    %c0_i32_1 = arith.constant 0 : i32
    return %c0_i32, %c0_i32_0 : i32, i32
  }
  func.func @transform_8(%arg0: i32) -> (i32, i32) {
    %c0_i32 = arith.constant 0 : i32
    %c0_i32_0 = arith.constant 0 : i32
    %c0_i32_1 = arith.constant 0 : i32
    return %c0_i32, %c0_i32_0 : i32, i32
  }
  func.func @transform_9(%arg0: i32) -> (i32, i32) {
    %c0_i32 = arith.constant 0 : i32
    %c0_i32_0 = arith.constant 0 : i32
    return %arg0, %c0_i32 : i32, i32
  }
}

</mosaic_0001>

<bundles_post_ra>
// kernel: mlp_forward.1
= control target key start
LH: loop header
LB: loop body
LE: loop exit
PB: predicated region body
PF: predicated region fallthrough
CT: control target
= control target key end

     0   :  { %s1401_s30 = smov 0   ;;  %s1729_s0 = inlined_call_operand.vmem [shape: f32[256,128], index: 0, kind: input, shape index: {}]   ;;  %s1730_s1 = inlined_call_operand.vmem [shape: f32[128,96], index: 1, kind: input, shape index: {}]   ;;  %s1731_s2 = inlined_call_operand.vmem [shape: f32[1,96], index: 2, kind: input, shape index: {}]   ;;  %s1732_s3 = inlined_call_operand.vmem [shape: f32[96,64], index: 3, kind: input, shape index: {}]   ;;  %s1733_s4 = inlined_call_operand.vmem [shape: f32[1,64], index: 4, kind: input, shape index: {}]   ;;  %s1734_s5 = inlined_call_operand.vmem [shape: f32[64,32], index: 5, kind: input, shape index: {}]   ;;  %s1735_s6 = inlined_call_operand.vmem [shape: f32[1,32], index: 6, kind: input, shape index: {}]   ;;  %s1736_s7 = inlined_call_operand.vmem [shape: f32[32,16], index: 7, kind: input, shape index: {}]   ;;  %s1737_s8 = inlined_call_operand.vmem [shape: f32[1,16], index: 8, kind: input, shape index: {}]   ;;  %s1738_s9 = inlined_call_operand.vmem [shape: f32[256,16], index: 9, kind: output, shape index: {}]  }
   0x1 LB: > { %s1144_s10 = sadd.s32 4294967295, %s1349_s30   ;;  %p1148_p0 = scmp.ge.s32.totalorder %s1349_s30, 1  ;;  %s1349_s30 = sphi %s1401_s30, %s19_s30  }
   0x2   : > { %p288_p1 = scmp.lt.s32.totalorder %s1349_s30, 3 }
   0x4   : > { %p289_p2 = pnand %p1148_p0, %p288_p1 }
   0x5   : > { %s1149_s27 = sshll.u32 (!%p289_p2), %s1144_s10, 4 }
   0x6   : > { %292 = sbr.rel (%p289_p2) target bundleno = 740 (0x2e4), region = 56  ;;  %p325_p3 = scmp.lt.s32.totalorder (!%p289_p2), %s1149_s27, 31 }
   0xb   : > { %v367_v0 = vld [vmem:[%s1730_s1 + $0x78] sm:$0xff]  ;;  %v366_v1 = vld [vmem:[%s1730_s1 + $0x70] sm:$0xff]  ;;  %v365_v2 = vld [vmem:[%s1730_s1 + $0x68] sm:$0xff]  ;;  %s1740_s27 = smov (!%p325_p3, %s1149_s27), 31  ;;  %vm517_vm0 = vcmask 785408   ;;  %vm707_vm1 = vcmask 523264  }
   0xc   : > { %372 = vmatpush.msra.mxu0 %v367_v0  ;;  %v364_v3 = vld [vmem:[%s1730_s1 + $0x60] sm:$0xff]  ;;  %v363_v4 = vld [vmem:[%s1730_s1 + $0x58] sm:$0xff]  ;;  %v362_v5 = vld [vmem:[%s1730_s1 + $0x50] sm:$0xff]  ;;  %s1150_s18 = sshll.u32 %s1740_s27, 3  ;;  %vm893_vm2 = vcmask 261120   ;;  %vm1071_vm3 = vcmask 130048  }
   0xd   : > { %v361_v6 = vld [vmem:[%s1730_s1 + $0x48] sm:$0xff]  ;;  %v360_v7 = vld [vmem:[%s1730_s1 + $0x40] sm:$0xff]  ;;  %v359_v8 = vld [vmem:[%s1730_s1 + $0x38] sm:$0xff]  ;;  %s1462_s25 = scalar_lea.vmem %s1729_s0, %s1150_s18  ;;  %s1678_s10 = scalar_lea.vmem %s1738_s9, %s1150_s18 }
   0xe   : > { %373 = vmatpush.msra.mxu0 %v366_v1  ;;  %v358_v9 = vld [vmem:[%s1730_s1 + $0x30] sm:$0xff]  ;;  %v357_v10 = vld [vmem:[%s1730_s1 + $0x28] sm:$0xff]  ;;  %v356_v11 = vld [vmem:[%s1730_s1 + $0x20] sm:$0xff] }
   0xf   : > { %v355_v12 = vld [vmem:[%s1730_s1 + $0x18] sm:$0xff]  ;;  %v354_v13 = vld [vmem:[%s1730_s1 + $0x10] sm:$0xff]  ;;  %v353_v14 = vld [vmem:[%s1730_s1 + $0x8] sm:$0xff] }
  0x10   : > { %374 = vmatpush.msra.mxu0 %v365_v2  ;;  %v352_v15 = vld [vmem:[%s1730_s1] sm:$0xff]  ;;  %v337_v17 = vld [vmem:[%s1462_s25 + $0x8] sm:$0xff]  ;;  %v338_v18 = vld [vmem:[%s1462_s25 + $0x10] sm:$0xff] }
  0x11   : > { %v336_v16 = vld [vmem:[%s1462_s25] sm:$0xff]  ;;  %v339_v19 = vld [vmem:[%s1462_s25 + $0x18] sm:$0xff]  ;;  %v341_v21 = vld [vmem:[%s1462_s25 + $0x28] sm:$0xff] }
  0x12   : > { %375 = vmatpush.msra.mxu0 %v364_v3  ;;  %v340_v20 = vld [vmem:[%s1462_s25 + $0x20] sm:$0xff]  ;;  %v342_v22 = vld [vmem:[%s1462_s25 + $0x30] sm:$0xff]  ;;  %v343_v23 = vld [vmem:[%s1462_s25 + $0x38] sm:$0xff] }
  0x13   : > { %v344_v24 = vld [vmem:[%s1462_s25 + $0x40] sm:$0xff]  ;;  %v345_v25 = vld [vmem:[%s1462_s25 + $0x48] sm:$0xff]  ;;  %v346_v26 = vld [vmem:[%s1462_s25 + $0x50] sm:$0xff] }
  0x14   : > { %376 = vmatpush.msra.mxu0 %v363_v4  ;;  %v512_v27 = vld [vmem:[%s1732_s3 + $0x58] sm:$0xff]  ;;  %v511_v29 = vld [vmem:[%s1732_s3 + $0x50] sm:$0xff]  ;;  %v510_v30 = vld [vmem:[%s1732_s3 + $0x48] sm:$0xff] }
  0x15   : > { %570 = vmatpush.msra.mxu1 %v512_v27  ;;  %v347_v28 = vld [vmem:[%s1462_s25 + $0x58] sm:$0xff]  ;;  %v509_v31 = vld [vmem:[%s1732_s3 + $0x40] sm:$0xff]  ;;  %v507_v34 = vld [vmem:[%s1732_s3 + $0x30] sm:$0xff] }
  0x16   : > { %377 = vmatpush.msra.mxu0 %v362_v5  ;;  %v348_v32 = vld [vmem:[%s1462_s25 + $0x60] sm:$0xff]  ;;  %v508_v33 = vld [vmem:[%s1732_s3 + $0x38] sm:$0xff]  ;;  %v506_v35 = vld [vmem:[%s1732_s3 + $0x28] sm:$0xff] }
  0x17   : > { %571 = vmatpush.msra.mxu1 %v511_v29  ;;  %v505_v36 = vld [vmem:[%s1732_s3 + $0x20] sm:$0xff]  ;;  %v349_v37 = vld [vmem:[%s1462_s25 + $0x68] sm:$0xff]  ;;  %v504_v38 = vld [vmem:[%s1732_s3 + $0x18] sm:$0xff] }
  0x18   : > { %378 = vmatpush.msra.mxu0 %v361_v6  ;;  %v503_v39 = vld [vmem:[%s1732_s3 + $0x10] sm:$0xff]  ;;  %v502_v40 = vld [vmem:[%s1732_s3 + $0x8] sm:$0xff]  ;;  %v501_v41 = vld [vmem:[%s1732_s3] sm:$0xff] }
  0x19   : > { %572 = vmatpush.msra.mxu1 %v510_v30  ;;  %v350_v42 = vld [vmem:[%s1462_s25 + $0x70] sm:$0xff]  ;;  %v351_v43 = vld [vmem:[%s1462_s25 + $0x78] sm:$0xff]  ;;  %v1522_v44 = vld [vmem:[%s1731_s2] ss:$0 sm:$0xff] }
  0x1a   : > { %379 = vmatpush.msra.mxu0 %v360_v7 }
  0x1b   : > { %573 = vmatpush.msra.mxu1 %v509_v31 }
  0x1c   : > { %380 = vmatpush.msra.mxu0 %v359_v8 }
  0x1d   : > { %574 = vmatpush.msra.mxu1 %v508_v33 }
  0x1e   : > { %381 = vmatpush.msra.mxu0 %v358_v9 }
  0x1f   : > { %575 = vmatpush.msra.mxu1 %v507_v34 }
  0x20   : > { %382 = vmatpush.msra.mxu0 %v357_v10 }
  0x21   : > { %576 = vmatpush.msra.mxu1 %v506_v35 }
  0x22   : > { %383 = vmatpush.msra.mxu0 %v356_v11 }
  0x23   : > { %577 = vmatpush.msra.mxu1 %v505_v36 }
  0x24   : > { %384 = vmatpush.msra.mxu0 %v355_v12 }
  0x25   : > { %578 = vmatpush.msra.mxu1 %v504_v38 }
  0x26   : > { %385 = vmatpush.msra.mxu0 %v354_v13 }
  0x27   : > { %579 = vmatpush.msra.mxu1 %v503_v39 }
  0x28   : > { %386 = vmatpush.msra.mxu0 %v353_v14 }
  0x29   : > { %580 = vmatpush.msra.mxu1 %v502_v40 }
  0x2a   : > { %387 = vmatpush.msra.mxu0 %v352_v15 }
  0x2b   : > { %388 = vmatmul.f32.vlgmr.msra.gmra.mxu0 %v336_v16  ;;  %581 = vmatpush.msra.mxu1 %v501_v41 }
  0x33   : > { %391 = vmatmul.f32.gmra.mxu0 %v337_v17 }
  0x3b   : > { %394 = vmatmul.f32.gmra.mxu0 %v338_v18 }
  0x43   : > { %397 = vmatmul.f32.gmra.mxu0 %v339_v19 }
  0x4b   : > { %400 = vmatmul.f32.gmra.mxu0 %v340_v20 }
  0x53   : > { %403 = vmatmul.f32.gmra.mxu0 %v341_v21 }
  0x5b   : > { %406 = vmatmul.f32.gmra.mxu0 %v342_v22 }
  0x63   : > { %409 = vmatmul.f32.gmra.mxu0 %v343_v23 }
  0x6b   : > { %412 = vmatmul.f32.gmra.mxu0 %v344_v24 }
  0x73   : > { %415 = vmatmul.f32.gmra.mxu0 %v345_v25 }
  0x7b   : > { %418 = vmatmul.f32.gmra.mxu0 %v346_v26 }
  0x83   : > { %421 = vmatmul.f32.gmra.mxu0 %v347_v28 }
  0x8b   : > { %424 = vmatmul.f32.gmra.mxu0 %v348_v32 }
  0x93   : > { %427 = vmatmul.f32.gmra.mxu0 %v349_v37 }
  0x9b   : > { %430 = vmatmul.f32.gmra.mxu0 %v350_v42 }
  0xa3   : > { %433 = vmatmul.f32.gmra.mxu0 %v351_v43 }
  0xa8   : > { %v389_v45 = vpop.f32.mrf.mxu0 }
  0xa9   : > { %v390_v46 = vadd.f32 %v1522_v44, %v389_v45 }
  0xab   : > { %v437_v47 = vmul.f32 0.5, %v390_v46 }
  0xad   : > { %1215 = vtanh.f32 %v437_v47 }
  0xb0   : > { %v392_v48 = vpop.f32.mrf.mxu0 }
  0xb1   : > { %v393_v49 = vadd.f32 %v1522_v44, %v392_v48 }
  0xb3   : > { %v1216_v50 = vpop.eup %1215  ;;  %v438_v51 = vmul.f32 0.5, %v393_v49 }
  0xb4   : > { %v469_v52 = vadd.f32 1.0, %v1216_v50 }
  0xb5   : > { %1217 = vtanh.f32 %v438_v51 }
  0xb6   : > { %v485_v53 = vmul.f32 0.5, %v469_v52 }
  0xb8   : > { %v395_v54 = vpop.f32.mrf.mxu0  ;;  %1153 = vmatmul.msk.f32.vlgmr.msra.gmra.mxu1 %vm517_vm0, %v485_v53 }
  0xb9   : > { %v396_v55 = vadd.f32 %v1522_v44, %v395_v54 }
  0xbb   : > { %v1218_v56 = vpop.eup %1217  ;;  %v439_v57 = vmul.f32 0.5, %v396_v55 }
  0xbc   : > { %v470_v58 = vadd.f32 1.0, %v1218_v56 }
  0xbd   : > { %1219 = vtanh.f32 %v439_v57 }
  0xbe   : > { %v486_v59 = vmul.f32 0.5, %v470_v58 }
  0xc0   : > { %v398_v60 = vpop.f32.mrf.mxu0  ;;  %1154 = vmatmul.msk.f32.gmra.mxu1 %vm517_vm0, %v486_v59 }
  0xc1   : > { %v399_v61 = vadd.f32 %v1522_v44, %v398_v60 }
  0xc3   : > { %v1220_v62 = vpop.eup %1219  ;;  %v440_v63 = vmul.f32 0.5, %v399_v61 }
  0xc4   : > { %v471_v0 = vadd.f32 1.0, %v1220_v62  ;;  %v702_v62 = vld [vmem:[%s1734_s5 + $0x38] sm:$0xff] }
  0xc5   : > { %1221 = vtanh.f32 %v440_v63  ;;  %764 = vmatpush.msra.mxu2 %v702_v62 }
  0xc6   : > { %v487_v1 = vmul.f32 0.5, %v471_v0  ;;  %v701_v0 = vld [vmem:[%s1734_s5 + $0x30] sm:$0xff] }
  0xc7   : > { %765 = vmatpush.msra.mxu2 %v701_v0 }
  0xc8   : > { %v401_v2 = vpop.f32.mrf.mxu0  ;;  %1155 = vmatmul.msk.f32.gmra.mxu1 %vm517_vm0, %v487_v1 }
  0xc9   : > { %v402_v3 = vadd.f32 %v1522_v44, %v401_v2 }
  0xcb   : > { %v1222_v4 = vpop.eup %1221  ;;  %v441_v5 = vmul.f32 0.5, %v402_v3  ;;  %v700_v3 = vld [vmem:[%s1734_s5 + $0x28] sm:$0xff] }
  0xcc   : > { %v472_v6 = vadd.f32 1.0, %v1222_v4  ;;  %766 = vmatpush.msra.mxu2 %v700_v3 }
  0xcd   : > { %1223 = vtanh.f32 %v441_v5 }
  0xce   : > { %v488_v7 = vmul.f32 0.5, %v472_v6  ;;  %v699_v6 = vld [vmem:[%s1734_s5 + $0x20] sm:$0xff] }
  0xcf   : > { %767 = vmatpush.msra.mxu2 %v699_v6 }
  0xd0   : > { %v404_v8 = vpop.f32.mrf.mxu0  ;;  %1156 = vmatmul.msk.f32.gmra.mxu1 %vm517_vm0, %v488_v7 }
  0xd1   : > { %v405_v9 = vadd.f32 %v1522_v44, %v404_v8  ;;  %v698_v8 = vld [vmem:[%s1734_s5 + $0x18] sm:$0xff] }
  0xd2   : > { %768 = vmatpush.msra.mxu2 %v698_v8 }
  0xd3   : > { %v1224_v10 = vpop.eup %1223  ;;  %v442_v11 = vmul.f32 0.5, %v405_v9 }
  0xd4   : > { %v473_v12 = vadd.f32 1.0, %v1224_v10  ;;  %v697_v10 = vld [vmem:[%s1734_s5 + $0x10] sm:$0xff] }
  0xd5   : > { %1225 = vtanh.f32 %v442_v11  ;;  %769 = vmatpush.msra.mxu2 %v697_v10 }
  0xd6   : > { %v489_v13 = vmul.f32 0.5, %v473_v12 }
  0xd8   : > { %v407_v14 = vpop.f32.mrf.mxu0  ;;  %1157 = vmatmul.msk.f32.gmra.mxu1 %vm517_vm0, %v489_v13  ;;  %v696_v13 = vld [vmem:[%s1734_s5 + $0x8] sm:$0xff] }
  0xd9   : > { %v408_v15 = vadd.f32 %v1522_v44, %v407_v14  ;;  %770 = vmatpush.msra.mxu2 %v696_v13 }
  0xdb   : > { %v1226_v16 = vpop.eup %1225  ;;  %v443_v17 = vmul.f32 0.5, %v408_v15 }
  0xdc   : > { %v474_v18 = vadd.f32 1.0, %v1226_v16  ;;  %v695_v16 = vld [vmem:[%s1734_s5] sm:$0xff] }
  0xdd   : > { %1227 = vtanh.f32 %v443_v17  ;;  %771 = vmatpush.msra.mxu2 %v695_v16 }
  0xde   : > { %v490_v19 = vmul.f32 0.5, %v474_v18 }
  0xe0   : > { %v410_v20 = vpop.f32.mrf.mxu0  ;;  %1158 = vmatmul.msk.f32.gmra.mxu1 %vm517_vm0, %v490_v19 }
  0xe1   : > { %v411_v21 = vadd.f32 %v1522_v44, %v410_v20 }
  0xe3   : > { %v1228_v22 = vpop.eup %1227  ;;  %v444_v23 = vmul.f32 0.5, %v411_v21  ;;  %v1583_v21 = vld [vmem:[%s1733_s4] ss:$0 sm:$0xff] }
  0xe4   : > { %v475_v24 = vadd.f32 1.0, %v1228_v22 }
  0xe5   : > { %1229 = vtanh.f32 %v444_v23 }
  0xe6   : > { %v491_v25 = vmul.f32 0.5, %v475_v24 }
  0xe8   : > { %v413_v26 = vpop.f32.mrf.mxu0  ;;  %1159 = vmatmul.msk.f32.gmra.mxu1 %vm517_vm0, %v491_v25 }
  0xe9   : > { %v414_v27 = vadd.f32 %v1522_v44, %v413_v26 }
  0xeb   : > { %v1230_v28 = vpop.eup %1229  ;;  %v445_v29 = vmul.f32 0.5, %v414_v27 }
  0xec   : > { %v476_v30 = vadd.f32 1.0, %v1230_v28 }
  0xed   : > { %1231 = vtanh.f32 %v445_v29 }
  0xee   : > { %v492_v31 = vmul.f32 0.5, %v476_v30 }
  0xf0   : > { %v416_v32 = vpop.f32.mrf.mxu0  ;;  %1160 = vmatmul.msk.f32.gmra.mxu1 %vm517_vm0, %v492_v31 }
  0xf1   : > { %v417_v33 = vadd.f32 %v1522_v44, %v416_v32 }
  0xf3   : > { %v1232_v34 = vpop.eup %1231  ;;  %v446_v35 = vmul.f32 0.5, %v417_v33 }
  0xf4   : > { %v477_v36 = vadd.f32 1.0, %v1232_v34 }
  0xf5   : > { %1233 = vtanh.f32 %v446_v35 }
  0xf6   : > { %v493_v37 = vmul.f32 0.5, %v477_v36 }
  0xf8   : > { %v419_v38 = vpop.f32.mrf.mxu0  ;;  %1161 = vmatmul.msk.f32.gmra.mxu1 %vm517_vm0, %v493_v37 }
  0xf9   : > { %v420_v39 = vadd.f32 %v1522_v44, %v419_v38 }
  0xfb   : > { %v1234_v40 = vpop.eup %1233  ;;  %v447_v41 = vmul.f32 0.5, %v420_v39 }
  0xfc   : > { %v478_v42 = vadd.f32 1.0, %v1234_v40 }
  0xfd   : > { %1235 = vtanh.f32 %v447_v41 }
  0xfe   : > { %v494_v43 = vmul.f32 0.5, %v478_v42 }
 0x100   : > { %v422_v45 = vpop.f32.mrf.mxu0  ;;  %1162 = vmatmul.msk.f32.gmra.mxu1 %vm517_vm0, %v494_v43 }
 0x101   : > { %v423_v46 = vadd.f32 %v1522_v44, %v422_v45 }
 0x103   : > { %v1236_v47 = vpop.eup %1235  ;;  %v448_v48 = vmul.f32 0.5, %v423_v46 }
 0x104   : > { %v479_v49 = vadd.f32 1.0, %v1236_v47 }
 0x105   : > { %1237 = vtanh.f32 %v448_v48 }
 0x106   : > { %v495_v50 = vmul.f32 0.5, %v479_v49 }
 0x108   : > { %v425_v51 = vpop.f32.mrf.mxu0  ;;  %1163 = vmatmul.msk.f32.gmra.mxu1 %vm517_vm0, %v495_v50 }
 0x109   : > { %v426_v52 = vadd.f32 %v1522_v44, %v425_v51 }
 0x10b   : > { %v1238_v53 = vpop.eup %1237  ;;  %v449_v54 = vmul.f32 0.5, %v426_v52 }
 0x10c   : > { %v480_v55 = vadd.f32 1.0, %v1238_v53 }
 0x10d   : > { %1239 = vtanh.f32 %v449_v54 }
 0x10e   : > { %v496_v56 = vmul.f32 0.5, %v480_v55 }
 0x110   : > { %v428_v57 = vpop.f32.mrf.mxu0  ;;  %1164 = vmatmul.msk.f32.gmra.mxu1 %vm517_vm0, %v496_v56 }
 0x111   : > { %v429_v58 = vadd.f32 %v1522_v44, %v428_v57 }
 0x113   : > { %v1240_v59 = vpop.eup %1239  ;;  %v450_v60 = vmul.f32 0.5, %v429_v58 }
 0x114   : > { %v481_v61 = vadd.f32 1.0, %v1240_v59 }
 0x115   : > { %1241 = vtanh.f32 %v450_v60 }
 0x116   : > { %v497_v63 = vmul.f32 0.5, %v481_v61 }
 0x118   : > { %v431_v1 = vpop.f32.mrf.mxu0  ;;  %1165 = vmatmul.msk.f32.gmra.mxu1 %vm517_vm0, %v497_v63 }
 0x119   : > { %v432_v2 = vadd.f32 %v1522_v44, %v431_v1 }
 0x11b   : > { %v1242_v4 = vpop.eup %1241  ;;  %v451_v5 = vmul.f32 0.5, %v432_v2 }
 0x11c   : > { %v482_v7 = vadd.f32 1.0, %v1242_v4 }
 0x11d   : > { %1243 = vtanh.f32 %v451_v5 }
 0x11e   : > { %v498_v9 = vmul.f32 0.5, %v482_v7 }
 0x120   : > { %v434_v11 = vpop.f32.mrf.mxu0  ;;  %1166 = vmatmul.msk.f32.gmra.mxu1 %vm517_vm0, %v498_v9 }
 0x121   : > { %v435_v12 = vadd.f32 %v1522_v44, %v434_v11 }
 0x123   : > { %v1244_v14 = vpop.eup %1243  ;;  %v452_v15 = vmul.f32 0.5, %v435_v12 }
 0x124   : > { %v483_v17 = vadd.f32 1.0, %v1244_v14 }
 0x125   : > { %1245 = vtanh.f32 %v452_v15 }
 0x126   : > { %v499_v18 = vmul.f32 0.5, %v483_v17 }
 0x128   : > { %1167 = vmatmul.msk.f32.gmra.mxu1 %vm517_vm0, %v499_v18 }
 0x12b   : > { %v1246_v19 = vpop.eup %1245 }
 0x12c   : > { %v484_v20 = vadd.f32 1.0, %v1246_v19 }
 0x12e   : > { %v500_v44 = vmul.f32 0.5, %v484_v20 }
 0x130   : > { %1168 = vmatmul.msk.f32.gmra.mxu1 %vm517_vm0, %v500_v44 }
 0x135   : > { %v583_v22 = vpop.f32.mrf.mxu1 }
 0x136   : > { %v584_v23 = vadd.f32 %v1583_v21, %v583_v22 }
 0x138   : > { %v631_v24 = vmul.f32 0.5, %v584_v23 }
 0x13a   : > { %1247 = vtanh.f32 %v631_v24 }
 0x13d   : > { %v586_v25 = vpop.f32.mrf.mxu1 }
 0x13e   : > { %v587_v26 = vadd.f32 %v1583_v21, %v586_v25 }
 0x140   : > { %v1248_v27 = vpop.eup %1247  ;;  %v632_v28 = vmul.f32 0.5, %v587_v26 }
 0x141   : > { %v663_v29 = vadd.f32 1.0, %v1248_v27 }
 0x142   : > { %1249 = vtanh.f32 %v632_v28 }
 0x143   : > { %v679_v30 = vmul.f32 0.5, %v663_v29 }
 0x145   : > { %v589_v31 = vpop.f32.mrf.mxu1  ;;  %1169 = vmatmul.msk.f32.vlgmr.msra.gmra.mxu2 %vm707_vm1, %v679_v30 }
 0x146   : > { %v590_v32 = vadd.f32 %v1583_v21, %v589_v31 }
 0x148   : > { %v1250_v33 = vpop.eup %1249  ;;  %v633_v34 = vmul.f32 0.5, %v590_v32 }
 0x149   : > { %v664_v35 = vadd.f32 1.0, %v1250_v33 }
 0x14a   : > { %1251 = vtanh.f32 %v633_v34 }
 0x14b   : > { %v680_v36 = vmul.f32 0.5, %v664_v35 }
 0x14d   : > { %v592_v37 = vpop.f32.mrf.mxu1  ;;  %1170 = vmatmul.msk.f32.gmra.mxu2 %vm707_vm1, %v680_v36 }
 0x14e   : > { %v593_v38 = vadd.f32 %v1583_v21, %v592_v37 }
 0x150   : > { %v1252_v39 = vpop.eup %1251  ;;  %v634_v40 = vmul.f32 0.5, %v593_v38 }
 0x151   : > { %v665_v41 = vadd.f32 1.0, %v1252_v39 }
 0x152   : > { %1253 = vtanh.f32 %v634_v40 }
 0x153   : > { %v681_v42 = vmul.f32 0.5, %v665_v41 }
 0x155   : > { %v595_v43 = vpop.f32.mrf.mxu1  ;;  %1171 = vmatmul.msk.f32.gmra.mxu2 %vm707_vm1, %v681_v42 }
 0x156   : > { %v596_v45 = vadd.f32 %v1583_v21, %v595_v43 }
 0x158   : > { %v1254_v46 = vpop.eup %1253  ;;  %v635_v47 = vmul.f32 0.5, %v596_v45 }
 0x159   : > { %v666_v48 = vadd.f32 1.0, %v1254_v46 }
 0x15a   : > { %1255 = vtanh.f32 %v635_v47 }
 0x15b   : > { %v682_v49 = vmul.f32 0.5, %v666_v48 }
 0x15d   : > { %v598_v50 = vpop.f32.mrf.mxu1  ;;  %1172 = vmatmul.msk.f32.gmra.mxu2 %vm707_vm1, %v682_v49 }
 0x15e   : > { %v599_v51 = vadd.f32 %v1583_v21, %v598_v50 }
 0x160   : > { %v1256_v52 = vpop.eup %1255  ;;  %v636_v53 = vmul.f32 0.5, %v599_v51  ;;  %v888_v51 = vld [vmem:[%s1736_s7 + $0x18] sm:$0xff] }
 0x161   : > { %v667_v54 = vadd.f32 1.0, %v1256_v52  ;;  %954 = vmatpush.msra.mxu3 %v888_v51 }
 0x162   : > { %1257 = vtanh.f32 %v636_v53  ;;  %v887_v53 = vld [vmem:[%s1736_s7 + $0x10] sm:$0xff] }
 0x163   : > { %v683_v55 = vmul.f32 0.5, %v667_v54  ;;  %955 = vmatpush.msra.mxu3 %v887_v53 }
 0x165   : > { %v601_v56 = vpop.f32.mrf.mxu1  ;;  %1173 = vmatmul.msk.f32.gmra.mxu2 %vm707_vm1, %v683_v55  ;;  %v886_v55 = vld [vmem:[%s1736_s7 + $0x8] sm:$0xff] }
 0x166   : > { %v602_v57 = vadd.f32 %v1583_v21, %v601_v56  ;;  %956 = vmatpush.msra.mxu3 %v886_v55 }
 0x168   : > { %v1258_v58 = vpop.eup %1257  ;;  %v637_v59 = vmul.f32 0.5, %v602_v57 }
 0x169   : > { %v668_v60 = vadd.f32 1.0, %v1258_v58 }
 0x16a   : > { %1259 = vtanh.f32 %v637_v59  ;;  %v1632_v59 = vld [vmem:[%s1735_s6] ss:$0 sm:$0xff] }
 0x16b   : > { %v684_v61 = vmul.f32 0.5, %v668_v60 }
 0x16d   : > { %v604_v62 = vpop.f32.mrf.mxu1  ;;  %1174 = vmatmul.msk.f32.gmra.mxu2 %vm707_vm1, %v684_v61 }
 0x16e   : > { %v605_v63 = vadd.f32 %v1583_v21, %v604_v62 }
 0x170   : > { %v1260_v0 = vpop.eup %1259  ;;  %v638_v1 = vmul.f32 0.5, %v605_v63 }
 0x171   : > { %v669_v2 = vadd.f32 1.0, %v1260_v0 }
 0x172   : > { %1261 = vtanh.f32 %v638_v1 }
 0x173   : > { %v685_v3 = vmul.f32 0.5, %v669_v2 }
 0x175   : > { %v607_v4 = vpop.f32.mrf.mxu1  ;;  %1175 = vmatmul.msk.f32.gmra.mxu2 %vm707_vm1, %v685_v3 }
 0x176   : > { %v608_v5 = vadd.f32 %v1583_v21, %v607_v4 }
 0x178   : > { %v1262_v6 = vpop.eup %1261  ;;  %v639_v7 = vmul.f32 0.5, %v608_v5 }
 0x179   : > { %v670_v8 = vadd.f32 1.0, %v1262_v6 }
 0x17a   : > { %1263 = vtanh.f32 %v639_v7 }
 0x17b   : > { %v686_v9 = vmul.f32 0.5, %v670_v8 }
 0x17d   : > { %v610_v10 = vpop.f32.mrf.mxu1  ;;  %1176 = vmatmul.msk.f32.gmra.mxu2 %vm707_vm1, %v686_v9 }
 0x17e   : > { %v611_v11 = vadd.f32 %v1583_v21, %v610_v10 }
 0x180   : > { %v1264_v12 = vpop.eup %1263  ;;  %v640_v13 = vmul.f32 0.5, %v611_v11 }
 0x181   : > { %v671_v14 = vadd.f32 1.0, %v1264_v12 }
 0x182   : > { %1265 = vtanh.f32 %v640_v13 }
 0x183   : > { %v687_v15 = vmul.f32 0.5, %v671_v14 }
 0x185   : > { %v613_v16 = vpop.f32.mrf.mxu1  ;;  %1177 = vmatmul.msk.f32.gmra.mxu2 %vm707_vm1, %v687_v15 }
 0x186   : > { %v614_v17 = vadd.f32 %v1583_v21, %v613_v16 }
 0x188   : > { %v1266_v18 = vpop.eup %1265  ;;  %v641_v19 = vmul.f32 0.5, %v614_v17 }
 0x189   : > { %v672_v20 = vadd.f32 1.0, %v1266_v18 }
 0x18a   : > { %1267 = vtanh.f32 %v641_v19 }
 0x18b   : > { %v688_v44 = vmul.f32 0.5, %v672_v20 }
 0x18d   : > { %v616_v22 = vpop.f32.mrf.mxu1  ;;  %1178 = vmatmul.msk.f32.gmra.mxu2 %vm707_vm1, %v688_v44 }
 0x18e   : > { %v617_v23 = vadd.f32 %v1583_v21, %v616_v22 }
 0x190   : > { %v1268_v24 = vpop.eup %1267  ;;  %v642_v25 = vmul.f32 0.5, %v617_v23 }
 0x191   : > { %v673_v26 = vadd.f32 1.0, %v1268_v24 }
 0x192   : > { %1269 = vtanh.f32 %v642_v25 }
 0x193   : > { %v689_v27 = vmul.f32 0.5, %v673_v26 }
 0x195   : > { %v619_v28 = vpop.f32.mrf.mxu1  ;;  %1179 = vmatmul.msk.f32.gmra.mxu2 %vm707_vm1, %v689_v27 }
 0x196   : > { %v620_v29 = vadd.f32 %v1583_v21, %v619_v28 }
 0x198   : > { %v1270_v30 = vpop.eup %1269  ;;  %v643_v31 = vmul.f32 0.5, %v620_v29 }
 0x199   : > { %v674_v32 = vadd.f32 1.0, %v1270_v30 }
 0x19a   : > { %1271 = vtanh.f32 %v643_v31 }
 0x19b   : > { %v690_v33 = vmul.f32 0.5, %v674_v32 }
 0x19d   : > { %v622_v34 = vpop.f32.mrf.mxu1  ;;  %1180 = vmatmul.msk.f32.gmra.mxu2 %vm707_vm1, %v690_v33 }
 0x19e   : > { %v623_v35 = vadd.f32 %v1583_v21, %v622_v34 }
 0x1a0   : > { %v1272_v36 = vpop.eup %1271  ;;  %v644_v37 = vmul.f32 0.5, %v623_v35 }
 0x1a1   : > { %v675_v38 = vadd.f32 1.0, %v1272_v36 }
 0x1a2   : > { %1273 = vtanh.f32 %v644_v37 }
 0x1a3   : > { %v691_v39 = vmul.f32 0.5, %v675_v38 }
 0x1a5   : > { %v625_v40 = vpop.f32.mrf.mxu1  ;;  %1181 = vmatmul.msk.f32.gmra.mxu2 %vm707_vm1, %v691_v39 }
 0x1a6   : > { %v626_v41 = vadd.f32 %v1583_v21, %v625_v40 }
 0x1a8   : > { %v1274_v42 = vpop.eup %1273  ;;  %v645_v43 = vmul.f32 0.5, %v626_v41 }
 0x1a9   : > { %v676_v45 = vadd.f32 1.0, %v1274_v42 }
 0x1aa   : > { %1275 = vtanh.f32 %v645_v43 }
 0x1ab   : > { %v692_v46 = vmul.f32 0.5, %v676_v45 }
 0x1ad   : > { %v628_v47 = vpop.f32.mrf.mxu1  ;;  %1182 = vmatmul.msk.f32.gmra.mxu2 %vm707_vm1, %v692_v46 }
 0x1ae   : > { %v629_v48 = vadd.f32 %v1583_v21, %v628_v47  ;;  %v885_v21 = vld [vmem:[%s1736_s7] sm:$0xff] }
 0x1af   : > { %957 = vmatpush.msra.mxu3 %v885_v21 }
 0x1b0   : > { %v1276_v49 = vpop.eup %1275  ;;  %v646_v50 = vmul.f32 0.5, %v629_v48 }
 0x1b1   : > { %v677_v52 = vadd.f32 1.0, %v1276_v49 }
 0x1b2   : > { %1277 = vtanh.f32 %v646_v50 }
 0x1b3   : > { %v693_v54 = vmul.f32 0.5, %v677_v52 }
 0x1b5   : > { %1183 = vmatmul.msk.f32.gmra.mxu2 %vm707_vm1, %v693_v54 }
 0x1b8   : > { %v1278_v56 = vpop.eup %1277 }
 0x1b9   : > { %v678_v57 = vadd.f32 1.0, %v1278_v56 }
 0x1bb   : > { %v694_v58 = vmul.f32 0.5, %v678_v57 }
 0x1bd   : > { %1184 = vmatmul.msk.f32.gmra.mxu2 %vm707_vm1, %v694_v58 }
 0x1c8   : > { %v773_v60 = vpop.f32.mrf.mxu2 }
 0x1c9   : > { %v774_v61 = vadd.f32 %v1632_v59, %v773_v60 }
 0x1cb   : > { %v821_v62 = vmul.f32 0.5, %v774_v61 }
 0x1cd   : > { %1279 = vtanh.f32 %v821_v62 }
 0x1d0   : > { %v776_v63 = vpop.f32.mrf.mxu2 }
 0x1d1   : > { %v777_v0 = vadd.f32 %v1632_v59, %v776_v63 }
 0x1d3   : > { %v1280_v1 = vpop.eup %1279  ;;  %v822_v2 = vmul.f32 0.5, %v777_v0 }
 0x1d4   : > { %v853_v3 = vadd.f32 1.0, %v1280_v1 }
 0x1d5   : > { %1281 = vtanh.f32 %v822_v2 }
 0x1d6   : > { %v869_v4 = vmul.f32 0.5, %v853_v3 }
 0x1d8   : > { %v779_v5 = vpop.f32.mrf.mxu2  ;;  %1185 = vmatmul.msk.f32.vlgmr.msra.gmra.mxu3 %vm893_vm2, %v869_v4 }
 0x1d9   : > { %v780_v6 = vadd.f32 %v1632_v59, %v779_v5 }
 0x1db   : > { %v1282_v7 = vpop.eup %1281  ;;  %v823_v8 = vmul.f32 0.5, %v780_v6 }
 0x1dc   : > { %v854_v9 = vadd.f32 1.0, %v1282_v7 }
 0x1dd   : > { %1283 = vtanh.f32 %v823_v8 }
 0x1de   : > { %v870_v10 = vmul.f32 0.5, %v854_v9 }
 0x1e0   : > { %v782_v11 = vpop.f32.mrf.mxu2  ;;  %1186 = vmatmul.msk.f32.gmra.mxu3 %vm893_vm2, %v870_v10 }
 0x1e1   : > { %v783_v12 = vadd.f32 %v1632_v59, %v782_v11 }
 0x1e3   : > { %v1284_v13 = vpop.eup %1283  ;;  %v824_v14 = vmul.f32 0.5, %v783_v12 }
 0x1e4   : > { %v855_v15 = vadd.f32 1.0, %v1284_v13 }
 0x1e5   : > { %1285 = vtanh.f32 %v824_v14 }
 0x1e6   : > { %v871_v16 = vmul.f32 0.5, %v855_v15 }
 0x1e8   : > { %v785_v17 = vpop.f32.mrf.mxu2  ;;  %1187 = vmatmul.msk.f32.gmra.mxu3 %vm893_vm2, %v871_v16 }
 0x1e9   : > { %v786_v18 = vadd.f32 %v1632_v59, %v785_v17 }
 0x1eb   : > { %v1286_v19 = vpop.eup %1285  ;;  %v825_v20 = vmul.f32 0.5, %v786_v18 }
 0x1ec   : > { %v856_v44 = vadd.f32 1.0, %v1286_v19 }
 0x1ed   : > { %1287 = vtanh.f32 %v825_v20 }
 0x1ee   : > { %v872_v22 = vmul.f32 0.5, %v856_v44 }
 0x1f0   : > { %v788_v23 = vpop.f32.mrf.mxu2  ;;  %1188 = vmatmul.msk.f32.gmra.mxu3 %vm893_vm2, %v872_v22 }
 0x1f1   : > { %v789_v24 = vadd.f32 %v1632_v59, %v788_v23 }
 0x1f3   : > { %v1288_v25 = vpop.eup %1287  ;;  %v826_v26 = vmul.f32 0.5, %v789_v24 }
 0x1f4   : > { %v857_v27 = vadd.f32 1.0, %v1288_v25 }
 0x1f5   : > { %1289 = vtanh.f32 %v826_v26 }
 0x1f6   : > { %v873_v28 = vmul.f32 0.5, %v857_v27 }
 0x1f8   : > { %v791_v29 = vpop.f32.mrf.mxu2  ;;  %1189 = vmatmul.msk.f32.gmra.mxu3 %vm893_vm2, %v873_v28 }
 0x1f9   : > { %v792_v30 = vadd.f32 %v1632_v59, %v791_v29  ;;  %v1669_v29 = vld [vmem:[%s1737_s8] ss:$0 sm:$0xff] }
 0x1fb   : > { %v1290_v31 = vpop.eup %1289  ;;  %v827_v32 = vmul.f32 0.5, %v792_v30 }
 0x1fc   : > { %v858_v33 = vadd.f32 1.0, %v1290_v31 }
 0x1fd   : > { %1291 = vtanh.f32 %v827_v32 }
 0x1fe   : > { %v874_v34 = vmul.f32 0.5, %v858_v33 }
 0x200   : > { %v794_v35 = vpop.f32.mrf.mxu2  ;;  %1190 = vmatmul.msk.f32.gmra.mxu3 %vm893_vm2, %v874_v34 }
 0x201   : > { %v795_v36 = vadd.f32 %v1632_v59, %v794_v35 }
 0x203   : > { %v1292_v37 = vpop.eup %1291  ;;  %v828_v38 = vmul.f32 0.5, %v795_v36 }
 0x204   : > { %v859_v39 = vadd.f32 1.0, %v1292_v37 }
 0x205   : > { %1293 = vtanh.f32 %v828_v38 }
 0x206   : > { %v875_v40 = vmul.f32 0.5, %v859_v39 }
 0x208   : > { %v797_v41 = vpop.f32.mrf.mxu2  ;;  %1191 = vmatmul.msk.f32.gmra.mxu3 %vm893_vm2, %v875_v40 }
 0x209   : > { %v798_v42 = vadd.f32 %v1632_v59, %v797_v41 }
 0x20b   : > { %v1294_v43 = vpop.eup %1293  ;;  %v829_v45 = vmul.f32 0.5, %v798_v42 }
 0x20c   : > { %v860_v46 = vadd.f32 1.0, %v1294_v43 }
 0x20d   : > { %1295 = vtanh.f32 %v829_v45 }
 0x20e   : > { %v876_v47 = vmul.f32 0.5, %v860_v46 }
 0x210   : > { %v800_v48 = vpop.f32.mrf.mxu2  ;;  %1192 = vmatmul.msk.f32.gmra.mxu3 %vm893_vm2, %v876_v47 }
 0x211   : > { %v801_v49 = vadd.f32 %v1632_v59, %v800_v48 }
 0x213   : > { %v1296_v50 = vpop.eup %1295  ;;  %v830_v51 = vmul.f32 0.5, %v801_v49 }
 0x214   : > { %v861_v52 = vadd.f32 1.0, %v1296_v50 }
 0x215   : > { %1297 = vtanh.f32 %v830_v51 }
 0x216   : > { %v877_v53 = vmul.f32 0.5, %v861_v52 }
 0x218   : > { %v803_v54 = vpop.f32.mrf.mxu2  ;;  %1193 = vmatmul.msk.f32.gmra.mxu3 %vm893_vm2, %v877_v53 }
 0x219   : > { %v804_v55 = vadd.f32 %v1632_v59, %v803_v54 }
 0x21b   : > { %v1298_v21 = vpop.eup %1297  ;;  %v831_v56 = vmul.f32 0.5, %v804_v55 }
 0x21c   : > { %v862_v57 = vadd.f32 1.0, %v1298_v21 }
 0x21d   : > { %1299 = vtanh.f32 %v831_v56 }
 0x21e   : > { %v878_v58 = vmul.f32 0.5, %v862_v57 }
 0x220   : > { %v806_v60 = vpop.f32.mrf.mxu2  ;;  %1194 = vmatmul.msk.f32.gmra.mxu3 %vm893_vm2, %v878_v58 }
 0x221   : > { %v807_v61 = vadd.f32 %v1632_v59, %v806_v60 }
 0x223   : > { %v1300_v62 = vpop.eup %1299  ;;  %v832_v63 = vmul.f32 0.5, %v807_v61 }
 0x224   : > { %v863_v0 = vadd.f32 1.0, %v1300_v62 }
 0x225   : > { %1301 = vtanh.f32 %v832_v63 }
 0x226   : > { %v879_v1 = vmul.f32 0.5, %v863_v0 }
 0x228   : > { %v809_v2 = vpop.f32.mrf.mxu2  ;;  %1195 = vmatmul.msk.f32.gmra.mxu3 %vm893_vm2, %v879_v1 }
 0x229   : > { %v810_v3 = vadd.f32 %v1632_v59, %v809_v2 }
 0x22b   : > { %v1302_v4 = vpop.eup %1301  ;;  %v833_v5 = vmul.f32 0.5, %v810_v3 }
 0x22c   : > { %v864_v6 = vadd.f32 1.0, %v1302_v4 }
 0x22d   : > { %1303 = vtanh.f32 %v833_v5 }
 0x22e   : > { %v880_v7 = vmul.f32 0.5, %v864_v6 }
 0x230   : > { %v812_v8 = vpop.f32.mrf.mxu2  ;;  %1196 = vmatmul.msk.f32.gmra.mxu3 %vm893_vm2, %v880_v7 }
 0x231   : > { %v813_v9 = vadd.f32 %v1632_v59, %v812_v8 }
 0x233   : > { %v1304_v10 = vpop.eup %1303  ;;  %v834_v11 = vmul.f32 0.5, %v813_v9 }
 0x234   : > { %v865_v12 = vadd.f32 1.0, %v1304_v10 }
 0x235   : > { %1305 = vtanh.f32 %v834_v11 }
 0x236   : > { %v881_v13 = vmul.f32 0.5, %v865_v12 }
 0x238   : > { %v815_v14 = vpop.f32.mrf.mxu2  ;;  %1197 = vmatmul.msk.f32.gmra.mxu3 %vm893_vm2, %v881_v13 }
 0x239   : > { %v816_v15 = vadd.f32 %v1632_v59, %v815_v14 }
 0x23b   : > { %v1306_v16 = vpop.eup %1305  ;;  %v835_v17 = vmul.f32 0.5, %v816_v15 }
 0x23c   : > { %v866_v18 = vadd.f32 1.0, %v1306_v16 }
 0x23d   : > { %1307 = vtanh.f32 %v835_v17 }
 0x23e   : > { %v882_v19 = vmul.f32 0.5, %v866_v18 }
 0x240   : > { %v818_v20 = vpop.f32.mrf.mxu2  ;;  %1198 = vmatmul.msk.f32.gmra.mxu3 %vm893_vm2, %v882_v19 }
 0x241   : > { %v819_v44 = vadd.f32 %v1632_v59, %v818_v20 }
 0x243   : > { %v1308_v22 = vpop.eup %1307  ;;  %v836_v23 = vmul.f32 0.5, %v819_v44 }
 0x244   : > { %v867_v24 = vadd.f32 1.0, %v1308_v22 }
 0x245   : > { %1309 = vtanh.f32 %v836_v23 }
 0x246   : > { %v883_v25 = vmul.f32 0.5, %v867_v24 }
 0x248   : > { %1199 = vmatmul.msk.f32.gmra.mxu3 %vm893_vm2, %v883_v25 }
 0x24b   : > { %v1310_v26 = vpop.eup %1309 }
 0x24c   : > { %v868_v27 = vadd.f32 1.0, %v1310_v26 }
 0x24e   : > { %v884_v28 = vmul.f32 0.5, %v868_v27 }
 0x250   : > { %1200 = vmatmul.msk.f32.gmra.mxu3 %vm893_vm2, %v884_v28 }
 0x25b   : > { %v959_v30 = vpop.f32.mrf.mxu3 }
 0x25c   : > { %v960_v59 = vadd.f32 %v1669_v29, %v959_v30 }
 0x25e   : > { %v1007_v31 = vmul.f32 0.5, %v960_v59 }
 0x260   : > { %1311 = vtanh.f32 %v1007_v31 }
 0x263   : > { %v962_v32 = vpop.f32.mrf.mxu3 }
 0x264   : > { %v963_v33 = vadd.f32 %v1669_v29, %v962_v32 }
 0x266   : > { %v1312_v34 = vpop.eup %1311  ;;  %v1008_v35 = vmul.f32 0.5, %v963_v33 }
 0x267   : > { %v1039_v36 = vadd.f32 1.0, %v1312_v34 }
 0x268   : > { %1313 = vtanh.f32 %v1008_v35 }
 0x269   : > { %v1055_v37 = vmul.f32 0.5, %v1039_v36 }
 0x26b   : > { %1072 = vst.msk [vmem:[%s1678_s10] sm:$0xff] %vm1071_vm3, %v1055_v37  ;;  %v965_v38 = vpop.f32.mrf.mxu3 }
 0x26c   : > { %v966_v39 = vadd.f32 %v1669_v29, %v965_v38 }
 0x26e   : > { %v1314_v40 = vpop.eup %1313  ;;  %v1009_v41 = vmul.f32 0.5, %v966_v39 }
 0x26f   : > { %v1040_v42 = vadd.f32 1.0, %v1314_v40 }
 0x270   : > { %1315 = vtanh.f32 %v1009_v41 }
 0x271   : > { %v1056_v43 = vmul.f32 0.5, %v1040_v42 }
 0x273   : > { %1073 = vst.msk [vmem:[%s1678_s10 + $0x8] sm:$0xff] %vm1071_vm3, %v1056_v43  ;;  %v968_v45 = vpop.f32.mrf.mxu3 }
 0x274   : > { %v969_v46 = vadd.f32 %v1669_v29, %v968_v45 }
 0x276   : > { %v1316_v47 = vpop.eup %1315  ;;  %v1010_v48 = vmul.f32 0.5, %v969_v46 }
 0x277   : > { %v1041_v49 = vadd.f32 1.0, %v1316_v47 }
 0x278   : > { %1317 = vtanh.f32 %v1010_v48 }
 0x279   : > { %v1057_v50 = vmul.f32 0.5, %v1041_v49 }
 0x27b   : > { %1074 = vst.msk [vmem:[%s1678_s10 + $0x10] sm:$0xff] %vm1071_vm3, %v1057_v50  ;;  %v971_v51 = vpop.f32.mrf.mxu3 }
 0x27c   : > { %v972_v52 = vadd.f32 %v1669_v29, %v971_v51 }
 0x27e   : > { %v1318_v53 = vpop.eup %1317  ;;  %v1011_v54 = vmul.f32 0.5, %v972_v52 }
 0x27f   : > { %v1042_v55 = vadd.f32 1.0, %v1318_v53 }
 0x280   : > { %1319 = vtanh.f32 %v1011_v54 }
 0x281   : > { %v1058_v21 = vmul.f32 0.5, %v1042_v55 }
 0x283   : > { %1075 = vst.msk [vmem:[%s1678_s10 + $0x18] sm:$0xff] %vm1071_vm3, %v1058_v21  ;;  %v974_v56 = vpop.f32.mrf.mxu3 }
 0x284   : > { %v975_v57 = vadd.f32 %v1669_v29, %v974_v56 }
 0x286   : > { %v1320_v58 = vpop.eup %1319  ;;  %v1012_v60 = vmul.f32 0.5, %v975_v57 }
 0x287   : > { %v1043_v61 = vadd.f32 1.0, %v1320_v58 }
 0x288   : > { %1321 = vtanh.f32 %v1012_v60 }
 0x289   : > { %v1059_v62 = vmul.f32 0.5, %v1043_v61 }
 0x28b   : > { %1076 = vst.msk [vmem:[%s1678_s10 + $0x20] sm:$0xff] %vm1071_vm3, %v1059_v62  ;;  %v977_v63 = vpop.f32.mrf.mxu3 }
 0x28c   : > { %v978_v0 = vadd.f32 %v1669_v29, %v977_v63 }
 0x28e   : > { %v1322_v1 = vpop.eup %1321  ;;  %v1013_v2 = vmul.f32 0.5, %v978_v0 }
 0x28f   : > { %v1044_v3 = vadd.f32 1.0, %v1322_v1 }
 0x290   : > { %1323 = vtanh.f32 %v1013_v2 }
 0x291   : > { %v1060_v4 = vmul.f32 0.5, %v1044_v3 }
 0x293   : > { %1077 = vst.msk [vmem:[%s1678_s10 + $0x28] sm:$0xff] %vm1071_vm3, %v1060_v4  ;;  %v980_v5 = vpop.f32.mrf.mxu3 }
 0x294   : > { %v981_v6 = vadd.f32 %v1669_v29, %v980_v5 }
 0x296   : > { %v1324_v7 = vpop.eup %1323  ;;  %v1014_v8 = vmul.f32 0.5, %v981_v6 }
 0x297   : > { %v1045_v9 = vadd.f32 1.0, %v1324_v7 }
 0x298   : > { %1325 = vtanh.f32 %v1014_v8 }
 0x299   : > { %v1061_v10 = vmul.f32 0.5, %v1045_v9 }
 0x29b   : > { %1078 = vst.msk [vmem:[%s1678_s10 + $0x30] sm:$0xff] %vm1071_vm3, %v1061_v10  ;;  %v983_v11 = vpop.f32.mrf.mxu3 }
 0x29c   : > { %v984_v12 = vadd.f32 %v1669_v29, %v983_v11 }
 0x29e   : > { %v1326_v13 = vpop.eup %1325  ;;  %v1015_v14 = vmul.f32 0.5, %v984_v12 }
 0x29f   : > { %v1046_v15 = vadd.f32 1.0, %v1326_v13 }
 0x2a0   : > { %1327 = vtanh.f32 %v1015_v14 }
 0x2a1   : > { %v1062_v16 = vmul.f32 0.5, %v1046_v15 }
 0x2a3   : > { %1079 = vst.msk [vmem:[%s1678_s10 + $0x38] sm:$0xff] %vm1071_vm3, %v1062_v16  ;;  %v986_v17 = vpop.f32.mrf.mxu3 }
 0x2a4   : > { %v987_v18 = vadd.f32 %v1669_v29, %v986_v17 }
 0x2a6   : > { %v1328_v19 = vpop.eup %1327  ;;  %v1016_v20 = vmul.f32 0.5, %v987_v18 }
 0x2a7   : > { %v1047_v44 = vadd.f32 1.0, %v1328_v19 }
 0x2a8   : > { %1329 = vtanh.f32 %v1016_v20 }
 0x2a9   : > { %v1063_v22 = vmul.f32 0.5, %v1047_v44 }
 0x2ab   : > { %1080 = vst.msk [vmem:[%s1678_s10 + $0x40] sm:$0xff] %vm1071_vm3, %v1063_v22  ;;  %v989_v23 = vpop.f32.mrf.mxu3 }
 0x2ac   : > { %v990_v24 = vadd.f32 %v1669_v29, %v989_v23 }
 0x2ae   : > { %v1330_v25 = vpop.eup %1329  ;;  %v1017_v26 = vmul.f32 0.5, %v990_v24 }
 0x2af   : > { %v1048_v27 = vadd.f32 1.0, %v1330_v25 }
 0x2b0   : > { %1331 = vtanh.f32 %v1017_v26 }
 0x2b1   : > { %v1064_v28 = vmul.f32 0.5, %v1048_v27 }
 0x2b3   : > { %1081 = vst.msk [vmem:[%s1678_s10 + $0x48] sm:$0xff] %vm1071_vm3, %v1064_v28  ;;  %v992_v30 = vpop.f32.mrf.mxu3 }
 0x2b4   : > { %v993_v59 = vadd.f32 %v1669_v29, %v992_v30 }
 0x2b6   : > { %v1332_v31 = vpop.eup %1331  ;;  %v1018_v32 = vmul.f32 0.5, %v993_v59 }
 0x2b7   : > { %v1049_v33 = vadd.f32 1.0, %v1332_v31 }
 0x2b8   : > { %1333 = vtanh.f32 %v1018_v32 }
 0x2b9   : > { %v1065_v34 = vmul.f32 0.5, %v1049_v33 }
 0x2bb   : > { %1082 = vst.msk [vmem:[%s1678_s10 + $0x50] sm:$0xff] %vm1071_vm3, %v1065_v34  ;;  %v995_v35 = vpop.f32.mrf.mxu3 }
 0x2bc   : > { %v996_v36 = vadd.f32 %v1669_v29, %v995_v35 }
 0x2be   : > { %v1334_v37 = vpop.eup %1333  ;;  %v1019_v38 = vmul.f32 0.5, %v996_v36 }
 0x2bf   : > { %v1050_v39 = vadd.f32 1.0, %v1334_v37 }
 0x2c0   : > { %1335 = vtanh.f32 %v1019_v38 }
 0x2c1   : > { %v1066_v40 = vmul.f32 0.5, %v1050_v39 }
 0x2c3   : > { %1083 = vst.msk [vmem:[%s1678_s10 + $0x58] sm:$0xff] %vm1071_vm3, %v1066_v40  ;;  %v998_v41 = vpop.f32.mrf.mxu3 }
 0x2c4   : > { %v999_v42 = vadd.f32 %v1669_v29, %v998_v41 }
 0x2c6   : > { %v1336_v43 = vpop.eup %1335  ;;  %v1020_v45 = vmul.f32 0.5, %v999_v42 }
 0x2c7   : > { %v1051_v46 = vadd.f32 1.0, %v1336_v43 }
 0x2c8   : > { %1337 = vtanh.f32 %v1020_v45 }
 0x2c9   : > { %v1067_v47 = vmul.f32 0.5, %v1051_v46 }
 0x2cb   : > { %1084 = vst.msk [vmem:[%s1678_s10 + $0x60] sm:$0xff] %vm1071_vm3, %v1067_v47  ;;  %v1001_v48 = vpop.f32.mrf.mxu3 }
 0x2cc   : > { %v1002_v49 = vadd.f32 %v1669_v29, %v1001_v48 }
 0x2ce   : > { %v1338_v50 = vpop.eup %1337  ;;  %v1021_v51 = vmul.f32 0.5, %v1002_v49 }
 0x2cf   : > { %v1052_v52 = vadd.f32 1.0, %v1338_v50 }
 0x2d0   : > { %1339 = vtanh.f32 %v1021_v51 }
 0x2d1   : > { %v1068_v53 = vmul.f32 0.5, %v1052_v52 }
 0x2d3   : > { %1085 = vst.msk [vmem:[%s1678_s10 + $0x68] sm:$0xff] %vm1071_vm3, %v1068_v53  ;;  %v1004_v54 = vpop.f32.mrf.mxu3 }
 0x2d4   : > { %v1005_v55 = vadd.f32 %v1669_v29, %v1004_v54 }
 0x2d6   : > { %v1340_v21 = vpop.eup %1339  ;;  %v1022_v56 = vmul.f32 0.5, %v1005_v55 }
 0x2d7   : > { %v1053_v57 = vadd.f32 1.0, %v1340_v21 }
 0x2d8   : > { %1341 = vtanh.f32 %v1022_v56 }
 0x2d9   : > { %v1069_v58 = vmul.f32 0.5, %v1053_v57 }
 0x2db   : > { %1086 = vst.msk [vmem:[%s1678_s10 + $0x70] sm:$0xff] %vm1071_vm3, %v1069_v58 }
 0x2de   : > { %v1342_v60 = vpop.eup %1341 }
 0x2df   : > { %v1054_v61 = vadd.f32 1.0, %v1342_v60 }
 0x2e1   : > { %v1070_v62 = vmul.f32 0.5, %v1054_v61 }
 0x2e3   : > { %1087 = vst.msk [vmem:[%s1678_s10 + $0x78] sm:$0xff] %vm1071_vm3, %v1070_v62 }
 0x2e4 PF: > { %s19_s30 = sadd.s32 1, %s1349_s30  }
 0x2e5   : > { %p16_p4 = scmp.ge.s32.totalorder %s19_s30, 4  }
 0x2e7   :  { %18 = sbr.rel (!%p16_p4) target bundleno = 1 (0x1), region = 86 }

</bundles_post_ra>
